<compile_context>
chip_gen: v7x
topology: tpu7x:2x2x1
jax: 0.10.0
libtpu: 0.0.40
codegen_flags: <defaults>
</compile_context>

<pallas_src>
import math
import functools

import jax
import jax.numpy as jnp
from jax.experimental import pallas as pl
from jax.experimental.pallas import tpu as pltpu


# -----------------------------------------------------------------------------
# Tiling helpers
# -----------------------------------------------------------------------------

def _pick_tile(dim, target, align):
    """Largest tile <= target that divides dim and is a multiple of `align`;
    falls back to the full dim (always legal: full-extent block)."""
    if dim <= target:
        return dim
    t = (target // align) * align
    while t >= align:
        if dim % t == 0:
            return t
        t -= align
    return dim


# -----------------------------------------------------------------------------
# Tiled linear kernel:  o = x @ w.T + b   (torch nn.Linear, weight is (N, K))
# -----------------------------------------------------------------------------

def _linear_kernel(x_ref, w_ref, b_ref, o_ref, acc_ref):
    kk = pl.program_id(2)

    @pl.when(kk == 0)
    def _():
        acc_ref[...] = jnp.zeros_like(acc_ref)

    # contract both operands on their last dim -> no materialized transpose
    acc_ref[...] += jax.lax.dot_general(
        x_ref[...], w_ref[...],
        dimension_numbers=(((1,), (1,)), ((), ())),
        preferred_element_type=jnp.float32)

    @pl.when(kk == pl.num_programs(2) - 1)
    def _():
        o_ref[...] = (acc_ref[...] + b_ref[...].astype(jnp.float32)
                      ).astype(o_ref.dtype)


def pallas_linear(x, w, b, *, out_dtype=None,
                  tm_target=256, tn_target=256, tk_target=512):
    """x: (M, K), w: (N, K), b: (N,) -> (M, N)."""
    M, K = x.shape
    N, K2 = w.shape
    assert K == K2
    out_dtype = out_dtype if out_dtype is not None else x.dtype

    tm = _pick_tile(M, tm_target, 16)     # sublane axis (bf16-safe alignment)
    tn = _pick_tile(N, tn_target, 128)    # lane axis of the output
    tk = _pick_tile(K, tk_target, 128)    # lane axis of the inputs
    grid = (M // tm, N // tn, K // tk)

    b2 = b.reshape(1, N)

    in_bytes = jnp.dtype(x.dtype).itemsize
    out_bytes = jnp.dtype(out_dtype).itemsize
    est = (2 * (tm * tk + tn * tk) * in_bytes   # double-buffered x/w tiles
           + 2 * tn * 4                          # bias tile
           + 2 * tm * tn * out_bytes             # output tile
           + tm * tn * 4                         # f32 accumulator
           + (2 << 20))                          # headroom
    cp_kwargs = dict(dimension_semantics=("parallel", "parallel", "arbitrary"))
    if est > (16 << 20):
        cp_kwargs["vmem_limit_bytes"] = int(min(est, 64 << 20))  # v7x-safe cap

    return pl.pallas_call(
        _linear_kernel,
        out_shape=jax.ShapeDtypeStruct((M, N), out_dtype),
        grid_spec=pltpu.PrefetchScalarGridSpec(
            num_scalar_prefetch=0,
            grid=grid,
            in_specs=[
                pl.BlockSpec((tm, tk), lambda i, j, kk: (i, kk)),
                pl.BlockSpec((tn, tk), lambda i, j, kk: (j, kk)),
                pl.BlockSpec((1, tn), lambda i, j, kk: (0, j)),
            ],
            out_specs=pl.BlockSpec((tm, tn), lambda i, j, kk: (i, j)),
            scratch_shapes=[pltpu.VMEM((tm, tn), jnp.float32)],
        ),
        compiler_params=pltpu.CompilerParams(**cp_kwargs),
    )(x, w, b2)


# -----------------------------------------------------------------------------
# Fused per-batch multi-head attention kernel
#   q_ref: (tq, h*d_k), k_ref: (nk, h*d_k), v_ref: (nk, h*d_v)
#   o_ref: (tq, h*d_v)   <- lane-dense output, no post-transpose needed
# -----------------------------------------------------------------------------

def _attn_kernel(q_ref, k_ref, v_ref, o_ref, *, d_k, d_v, h, compute_dtype):
    q = q_ref[...]
    k = k_ref[...]
    v = v_ref[...]

    scale = jnp.asarray(1.0 / math.sqrt(d_k), dtype=compute_dtype)

    outs = []
    for head in range(h):                       # static unroll (h is small)
        qh = q[:, head * d_k:(head + 1) * d_k].astype(compute_dtype) * scale
        kh = k[:, head * d_k:(head + 1) * d_k].astype(compute_dtype)
        vh = v[:, head * d_v:(head + 1) * d_v].astype(compute_dtype)

        # (tq, d_k) x (nk, d_k) -> (tq, nk), contraction on the feature axis
        s = jax.lax.dot_general(
            qh, kh,
            dimension_numbers=(((1,), (1,)), ((), ())),
            preferred_element_type=jnp.float32)

        # numerically-stable softmax over keys (f32 statistics)
        s = s - jnp.max(s, axis=-1, keepdims=True)
        p = jnp.exp(s)
        inv = pl.reciprocal(jnp.sum(p, axis=-1, keepdims=True), approx=True)
        p = p * inv

        oh = jnp.dot(p.astype(compute_dtype), vh,
                     preferred_element_type=jnp.float32)
        outs.append(oh)

    # single lane-dense store in (tq, h*d_v) layout
    o_ref[...] = jnp.concatenate(outs, axis=-1).astype(o_ref.dtype)


def pallas_attention(q, k, v, *, d_k, d_v, h, out_dtype=None, tq_target=256):
    """q: (b_s, nq, h*d_k), k: (b_s, nk, h*d_k), v: (b_s, nk, h*d_v)
       -> (b_s, nq, h*d_v)"""
    b_s, nq, hdk = q.shape
    nk = k.shape[1]
    hdv = v.shape[2]
    out_dtype = out_dtype if out_dtype is not None else q.dtype
    compute_dtype = q.dtype

    tq = _pick_tile(nq, tq_target, 16)
    grid = (b_s, nq // tq)

    in_bytes = jnp.dtype(q.dtype).itemsize
    out_bytes = jnp.dtype(out_dtype).itemsize
    est = (2 * (tq * hdk + nk * hdk + nk * hdv) * in_bytes
           + 2 * tq * hdv * out_bytes
           + tq * nk * 4 * 2          # live score / prob tile
           + (2 << 20))
    cp_kwargs = dict(dimension_semantics=("parallel", "parallel"))
    if est > (16 << 20):
        cp_kwargs["vmem_limit_bytes"] = int(min(est, 64 << 20))

    # TODO(synk): for very long sequences (esp. v7x 64 MiB VMEM) add a kv grid
    # axis with flash-style online softmax instead of the full (tq, nk) scores.
    kernel = functools.partial(_attn_kernel, d_k=d_k, d_v=d_v, h=h,
                               compute_dtype=compute_dtype)
    return pl.pallas_call(
        kernel,
        out_shape=jax.ShapeDtypeStruct((b_s, nq, hdv), out_dtype),
        grid_spec=pltpu.PrefetchScalarGridSpec(
            num_scalar_prefetch=0,
            grid=grid,
            in_specs=[
                pl.BlockSpec((None, tq, hdk), lambda b, qi: (b, qi, 0)),
                pl.BlockSpec((None, nk, hdk), lambda b, qi: (b, 0, 0)),
                pl.BlockSpec((None, nk, hdv), lambda b, qi: (b, 0, 0)),
            ],
            out_specs=pl.BlockSpec((None, tq, hdv), lambda b, qi: (b, qi, 0)),
        ),
        compiler_params=pltpu.CompilerParams(**cp_kwargs),
    )(q, k, v)


# -----------------------------------------------------------------------------
# Parameter init (mirrors xavier_uniform_ + zero bias)
# -----------------------------------------------------------------------------

def _xavier_uniform(key, shape):
    fan_out, fan_in = shape            # torch nn.Linear weight is (out, in)
    bound = math.sqrt(6.0 / (fan_in + fan_out))
    return jax.random.uniform(key, shape, dtype=jnp.float32,
                              minval=-bound, maxval=bound)


def init_params(key, d_model, d_k, d_v, h):
    ks = jax.random.split(key, 4)
    return {
        "wq": _xavier_uniform(ks[0], (h * d_k, d_model)),
        "bq": jnp.zeros((h * d_k,), jnp.float32),
        "wk": _xavier_uniform(ks[1], (h * d_k, d_model)),
        "bk": jnp.zeros((h * d_k,), jnp.float32),
        "wv": _xavier_uniform(ks[2], (h * d_v, d_model)),
        "bv": jnp.zeros((h * d_v,), jnp.float32),
        "wo": _xavier_uniform(ks[3], (d_model, h * d_v)),
        "bo": jnp.zeros((d_model,), jnp.float32),
    }


# -----------------------------------------------------------------------------
# Forward (no head-split transposes; only free reshapes outside the kernels)
# -----------------------------------------------------------------------------

def scaled_dot_product_attention(params, queries, keys, values, d_k, d_v, h,
                                 compute_dtype=jnp.float32):
    b_s, nq, d_model = queries.shape
    nk = keys.shape[1]
    cd = compute_dtype

    xq = queries.reshape(b_s * nq, d_model).astype(cd)
    xk = keys.reshape(b_s * nk, d_model).astype(cd)
    xv = values.reshape(b_s * nk, d_model).astype(cd)

    q = pallas_linear(xq, params["wq"].astype(cd), params["bq"], out_dtype=cd)
    k = pallas_linear(xk, params["wk"].astype(cd), params["bk"], out_dtype=cd)
    v = pallas_linear(xv, params["wv"].astype(cd), params["bv"], out_dtype=cd)

    # keep lane-dense (b_s, seq, h*d) layout: pure reshapes, no HBM transposes
    q = q.reshape(b_s, nq, h * d_k)
    k = k.reshape(b_s, nk, h * d_k)
    v = v.reshape(b_s, nk, h * d_v)

    # TODO(synk): attention_mask / attention_weights (None in the reference
    # call path) are not implemented.
    out = pallas_attention(q, k, v, d_k=d_k, d_v=d_v, h=h, out_dtype=cd)

    out = pallas_linear(out.reshape(b_s * nq, h * d_v),
                        params["wo"].astype(cd), params["bo"],
                        out_dtype=queries.dtype)
    return out.reshape(b_s, nq, d_model)


# -----------------------------------------------------------------------------
# Pure-JAX reference (sanity check)
# -----------------------------------------------------------------------------

def reference(params, queries, keys, values, d_k, d_v, h):
    b_s, nq, d_model = queries.shape
    nk = keys.shape[1]
    q = queries @ params["wq"].T + params["bq"]
    k = keys @ params["wk"].T + params["bk"]
    v = values @ params["wv"].T + params["bv"]
    q = q.reshape(b_s, nq, h, d_k).transpose(0, 2, 1, 3)
    k = k.reshape(b_s, nk, h, d_k).transpose(0, 2, 1, 3)
    v = v.reshape(b_s, nk, h, d_v).transpose(0, 2, 1, 3)
    att = jnp.einsum("bhqd,bhkd->bhqk", q, k) / math.sqrt(d_k)
    att = jax.nn.softmax(att, axis=-1)
    out = jnp.einsum("bhqk,bhkd->bhqd", att, v)
    out = out.transpose(0, 2, 1, 3).reshape(b_s, nq, h * d_v)
    return out @ params["wo"].T + params["bo"]


# -----------------------------------------------------------------------------

if __name__ == "__main__":
    d_model, d_k, d_v, h = 32, 8, 8, 4
    b_s, nq, nk = 2, 8, 8

    key = jax.random.PRNGKey(0)
    kp, kq, kk_, kv = jax.random.split(key, 4)
    params = init_params(kp, d_model, d_k, d_v, h)

    queries = jax.random.normal(kq, (b_s, nq, d_model), dtype=jnp.float32)
    keys = jax.random.normal(kk_, (b_s, nk, d_model), dtype=jnp.float32)
    values = jax.random.normal(kv, (b_s, nk, d_model), dtype=jnp.float32)

    ref = reference(params, queries, keys, values, d_k, d_v, h)

    # f32 compute path
    out = scaled_dot_product_attention(params, queries, keys, values,
                                       d_k, d_v, h)
    out = jax.block_until_ready(out)
    assert out.shape == (b_s, nq, d_model), out.shape
    assert jnp.allclose(out, ref, atol=5e-3, rtol=5e-3), "f32 mismatch vs ref"

    # bf16 MXU-input path (f32 accumulation / softmax stats) — looser tolerance
    out_bf16 = scaled_dot_product_attention(params, queries, keys, values,
                                            d_k, d_v, h,
                                            compute_dtype=jnp.bfloat16)
    out_bf16 = jax.block_until_ready(out_bf16)
    assert jnp.allclose(out_bf16.astype(jnp.float32), ref,
                        atol=1e-1, rtol=1e-1), "bf16 mismatch vs ref"

    print("KERNEL_OK")
</pallas_src>

<mosaic_0001>
module attributes {stable_mosaic.version = 11 : i64} {
  func.func @_linear_kernel(%arg0: i32, %arg1: i32, %arg2: i32, %arg3: memref<16x32xf32, #tpu.memory_space<vmem>>, %arg4: memref<32x32xf32, #tpu.memory_space<vmem>>, %arg5: memref<1x32xf32, #tpu.memory_space<vmem>>, %arg6: memref<16x32xf32, #tpu.memory_space<vmem>>, %arg7: memref<16x32xf32, #tpu.memory_space<vmem>>) attributes {dimension_semantics = [#tpu.dimension_semantics<parallel>, #tpu.dimension_semantics<parallel>, #tpu.dimension_semantics<arbitrary>], iteration_bounds = array<i64: 1, 1, 1>, scalar_prefetch = 0 : i64, scratch_operands = 1 : i64, tpu.core_type = #tpu.core_type<tc>, window_params = [{transform_indices = @transform_0, window_bounds = array<i64: 16, 32>}, {transform_indices = @transform_1, window_bounds = array<i64: 32, 32>}, {transform_indices = @transform_2, window_bounds = array<i64: 1, 32>}, {transform_indices = @transform_3, window_bounds = array<i64: 16, 32>}]} {
    %c0_i32 = arith.constant 0 : i32
    %0 = arith.cmpi eq, %arg2, %c0_i32 : i32
    %1 = arith.extui %0 : i1 to i32
    %c0_i32_0 = arith.constant 0 : i32
    %2 = arith.cmpi ne, %1, %c0_i32_0 : i32
    scf.if %2 {
      %cst_10 = arith.constant 0.000000e+00 : f32
      %12 = vector.broadcast %cst_10 : f32 to vector<16x32xf32>
      %c0_11 = arith.constant 0 : index
      %c0_12 = arith.constant 0 : index
      %13 = vector.load %arg7[%c0_11, %c0_12] : memref<16x32xf32, #tpu.memory_space<vmem>>, vector<16x32xf32>
      tpu.vector_store %arg7[%c0_11, %c0_12], %12 {strides = array<i32>} : memref<16x32xf32, #tpu.memory_space<vmem>>, vector<16x32xf32>,
    } else {
    }
    %c0 = arith.constant 0 : index
    %c0_1 = arith.constant 0 : index
    %3 = vector.load %arg7[%c0, %c0_1] : memref<16x32xf32, #tpu.memory_space<vmem>>, vector<16x32xf32>
    %c0_2 = arith.constant 0 : index
    %c0_3 = arith.constant 0 : index
    %4 = vector.load %arg3[%c0_2, %c0_3] : memref<16x32xf32, #tpu.memory_space<vmem>>, vector<16x32xf32>
    %c0_4 = arith.constant 0 : index
    %c0_5 = arith.constant 0 : index
    %5 = vector.load %arg4[%c0_4, %c0_5] : memref<32x32xf32, #tpu.memory_space<vmem>>, vector<32x32xf32>
    %cst = arith.constant dense<0.000000e+00> : vector<16x32xf32>
    %6 = tpu.matmul %4, %5, %cst {dimension_numbers = #tpu.dot_dimension_numbers<[1], [1], [0], [0], [0, 0, 1, 0], [], []>} : vector<16x32xf32>, vector<32x32xf32>, vector<16x32xf32> -> vector<16x32xf32>
    %7 = arith.addf %3, %6 : vector<16x32xf32>
    %c0_6 = arith.constant 0 : index
    %c0_7 = arith.constant 0 : index
    %8 = vector.load %arg7[%c0_6, %c0_7] : memref<16x32xf32, #tpu.memory_space<vmem>>, vector<16x32xf32>
    tpu.vector_store %arg7[%c0_6, %c0_7], %7 {strides = array<i32>} : memref<16x32xf32, #tpu.memory_space<vmem>>, vector<16x32xf32>,
    %c0_i32_8 = arith.constant 0 : i32
    %9 = arith.cmpi eq, %arg2, %c0_i32_8 : i32
    %10 = arith.extui %9 : i1 to i32
    %c0_i32_9 = arith.constant 0 : i32
    %11 = arith.cmpi ne, %10, %c0_i32_9 : i32
    scf.if %11 {
      %c0_10 = arith.constant 0 : index
      %c0_11 = arith.constant 0 : index
      %12 = vector.load %arg7[%c0_10, %c0_11] : memref<16x32xf32, #tpu.memory_space<vmem>>, vector<16x32xf32>
      %c0_12 = arith.constant 0 : index
      %c0_13 = arith.constant 0 : index
      %13 = vector.load %arg5[%c0_12, %c0_13] : memref<1x32xf32, #tpu.memory_space<vmem>>, vector<1x32xf32>
      %14 = vector.broadcast %13 : vector<1x32xf32> to vector<16x32xf32>
      %15 = arith.addf %12, %14 : vector<16x32xf32>
      %c0_14 = arith.constant 0 : index
      %c0_15 = arith.constant 0 : index
      %16 = vector.load %arg6[%c0_14, %c0_15] : memref<16x32xf32, #tpu.memory_space<vmem>>, vector<16x32xf32>
      tpu.vector_store %arg6[%c0_14, %c0_15], %15 {strides = array<i32>} : memref<16x32xf32, #tpu.memory_space<vmem>>, vector<16x32xf32>,
    } else {
    }
    return
  }
  func.func @transform_0(%arg0: i32, %arg1: i32, %arg2: i32) -> (i32, i32) {
    %c0_i32 = arith.constant 0 : i32
    return %arg0, %arg2 : i32, i32
  }
  func.func @transform_1(%arg0: i32, %arg1: i32, %arg2: i32) -> (i32, i32) {
    %c0_i32 = arith.constant 0 : i32
    return %arg1, %arg2 : i32, i32
  }
  func.func @transform_2(%arg0: i32, %arg1: i32, %arg2: i32) -> (i32, i32) {
    %c0_i32 = arith.constant 0 : i32
    %c0_i32_0 = arith.constant 0 : i32
    return %c0_i32, %arg1 : i32, i32
  }
  func.func @transform_3(%arg0: i32, %arg1: i32, %arg2: i32) -> (i32, i32) {
    %c0_i32 = arith.constant 0 : i32
    return %arg0, %arg1 : i32, i32
  }
}

</mosaic_0001>

<bundles_post_ra>
// kernel: tpu_custom_call.1
= control target key start
LH: loop header
LB: loop body
LE: loop exit
PB: predicated region body
PF: predicated region fallthrough
CT: control target
= control target key end

     0   :  { %8 = vsyncpa [#allocation4], 0  ;;  %s388_s0 = inlined_call_operand.hbm [shape: f32[16,32], index: 0, kind: input, shape index: {}]   ;;  %s389_s1 = inlined_call_operand.hbm [shape: f32[32,32], index: 1, kind: input, shape index: {}]   ;;  %s390_s2 = inlined_call_operand.vmem [shape: f32[1,32], index: 2, kind: input, shape index: {}]   ;;  %s391_s3 = inlined_call_operand.hbm [shape: f32[16,32], index: 3, kind: output, shape index: {}]  }
   0x1   :  { %9 = vsyncpa [#allocation7], 0 }
   0x2   :  { %10 = vsyncpa [#allocation5], 0  ;;  %s304_s12 = smov [#allocation3]   ;;  %s232_s16 = scalar_lea.hbm %s388_s0, 256 }
   0x3   :  { %s16_s13 = sshll.u32 %s304_s12, 4  ;;  %p233_p0 = scmp.ne.s32.totalorder %s388_s0, %s232_s16  ;;  %s17_s13 = int_to_ptr.vmem [resolvable:$true] %s16_s13 }
   0x4   :  { %p236_p1 = scmp.lt.u32.totalorder %s232_s16, %s388_s0 }
   0x6   :  { %p238_p2 = pnand %p236_p1, %p233_p0 }
   0x8   :  { %241 = shalt.err (!%p238_p2)
}
   0x9   :  { %s242_s21 = scalar_lea.vmem %s17_s13, 256  ;;  %p247_p4 = scmp.lt.s32.totalorder %s17_s13, %s17_s13 }
   0xa   :  { %p243_p3 = scmp.ne.s32.totalorder %s17_s13, %s242_s21  ;;  %p248_p5 = scmp.lt.s32.totalorder %s242_s21, %s242_s21 }
   0xc   :  { %p249_p6 = por %p248_p5, %p247_p4 }
   0xe   :  { %p250_p7 = pnand %p249_p6, %p243_p3 }
  0x10   :  { %253 = shalt.err (!%p250_p7)
}
  0x11   :  { %s305_s22 = smov 128   ;;  %s306_s23 = smov 8  }
  0x12   :  { %22 = dma.hbm_to_vmem [thread:$0]  %s388_s0, 256, %s17_s13, [#allocation4], %s305_s22, %s305_s22, %s306_s23  }
  0x13   :  { %s307_s26 = smov [#allocation6]   ;;  %s254_s30 = scalar_lea.hbm %s389_s1, 512 }
  0x14   :  { %s28_s27 = sshll.u32 %s307_s26, 4  ;;  %p255_p8 = scmp.ne.s32.totalorder %s389_s1, %s254_s30  ;;  %s29_s27 = int_to_ptr.vmem [resolvable:$true] %s28_s27 }
  0x15   :  { %p258_p9 = scmp.lt.u32.totalorder %s254_s30, %s389_s1 }
  0x17   :  { %p260_p10 = pnand %p258_p9, %p255_p8 }
  0x19   :  { %263 = shalt.err (!%p260_p10)
}
  0x1a   :  { %s264_s8 = scalar_lea.vmem %s29_s27, 512  ;;  %p269_p12 = scmp.lt.s32.totalorder %s29_s27, %s29_s27 }
  0x1b   :  { %p265_p11 = scmp.ne.s32.totalorder %s29_s27, %s264_s8  ;;  %p270_p13 = scmp.lt.s32.totalorder %s264_s8, %s264_s8 }
  0x1d   :  { %p271_p0 = por %p270_p13, %p269_p12 }
  0x1f   :  { %p272_p1 = pnand %p271_p0, %p265_p11 }
  0x21   :  { %275 = shalt.err (!%p272_p1)
}
  0x22   :  { %34 = dma.hbm_to_vmem [thread:$0]  %s389_s1, 512, %s29_s27, [#allocation7], %s305_s22, %s305_s22, %s306_s23  }
  0x23   :  { %298 = dma.done.wait [#allocation4], 256  }
  0x24   :  { %299 = vsyncadd [#allocation4], 4294967040 }
  0x25   :  { %300 = dma.done.wait [#allocation7], 512  }
  0x26   :  { %301 = vsyncadd [#allocation7], 4294966784  ;;  %vm47_vm0 = vcmask 261120   ;;  %v308_v0 = vmov 0.0   ;;  %v54_v1 = vld [vmem:[#allocation6] sm:$0xff]  ;;  %v55_v2 = vld [vmem:[#allocation6 + $0x8] sm:$0xff] }
  0x27   :  { %49 = vst.msk [vmem:[#allocation2 + $0x8] sm:$0xff] %vm47_vm0, %v308_v0  ;;  %48 = vst.msk [vmem:[#allocation2] sm:$0xff] %vm47_vm0, %v308_v0  ;;  %v56_v3 = vld [vmem:[#allocation6 + $0x10] sm:$0xff]  ;;  %v214_v4 = vpack.c.bf16 %v55_v2, %v54_v1  ;;  %v57_v5 = vld [vmem:[#allocation6 + $0x18] sm:$0xff]  ;;  %s309_s11 = smov [#allocation8]  }
  0x28   :  { %vm215_vm1 = vmpackc.low %vm47_vm0, %vm47_vm0  ;;  %v52_v6 = vld [vmem:[#allocation3] sm:$0xff]  ;;  %v220_v7 = vpack.c.bf16 %v57_v5, %v56_v3  ;;  %v53_v8 = vld [vmem:[#allocation3 + $0x8] sm:$0xff]  ;;  %s177_s12 = sshll.u32 %s309_s11, 4  ;;  %s178_s12 = int_to_ptr.vmem [resolvable:$true] %s177_s12 }
  0x29   :  { %211 = vmatprep.mubr.msk.f32.mxu0 %vm47_vm0, %v52_v6  ;;  %216 = vmatprep.subr.msk.bf16.mxu0 %vm215_vm1, %v214_v4  ;;  %v196_v15 = vld [vmem:[%s390_s2] ss:$0 sm:$0xff]  ;;  %s276_s13 = scalar_lea.vmem %s178_s12, 256  ;;  %p281_p3 = scmp.lt.s32.totalorder %s178_s12, %s178_s12 }
  0x2a   :  { %219 = vmatpush3.bf16.xpose.msk.msra.mxu0 %vm215_vm1, %v214_v4  ;;  %p277_p2 = scmp.ne.s32.totalorder %s178_s12, %s276_s13  ;;  %p282_p4 = scmp.lt.s32.totalorder %s276_s13, %s276_s13 }
  0x2b   :  { %222 = vmatprep.subr.msk.bf16.mxu0 %vm215_vm1, %v220_v7 }
  0x2c   :  { %p283_p5 = por %p282_p4, %p281_p3 }
  0x2e   :  { %v51_v9 = vld [vmem:[#allocation2 + $0x8] sm:$0xff]  ;;  %v50_v10 = vld [vmem:[#allocation2] sm:$0xff]  ;;  %p284_p6 = pnand %p283_p5, %p277_p2 }
  0x32   :  { %225 = vmatpush3.bf16.xpose.msk.msra.mxu0 %vm215_vm1, %v220_v7 }
  0x39   :  { %212 = vmatmul.mubr.msk.f32.vlgmr.msra.gmra.mrb[0].mxu0 %vm47_vm0, %v53_v8 }
 0x10c   :  { %v213_v11 = vpop.f32.mrb[0].mxu0 }
 0x10d   :  { %v153_v12 = vadd.f32 %v213_v11, %v51_v9  ;;  %v143_v13 = vpop.f32.mrb[1].mxu0 }
 0x10e   :  { %v152_v14 = vadd.f32 %v143_v13, %v50_v10 }
 0x10f   :  { %155 = vst.msk [vmem:[#allocation2 + $0x8] sm:$0xff] %vm47_vm0, %v153_v12 }
 0x110   :  { %154 = vst.msk [vmem:[#allocation2] sm:$0xff] %vm47_vm0, %v152_v14 }
 0x116   :  { %v160_v16 = vld [vmem:[#allocation2 + $0x8] sm:$0xff] }
 0x117   :  { %v159_v17 = vld [vmem:[#allocation2] sm:$0xff]  ;;  %v169_v18 = vadd.f32 %v196_v15, %v160_v16 }
 0x118   :  { %v168_v19 = vadd.f32 %v196_v15, %v159_v17 }
 0x119   :  { %171 = vst.msk [vmem:[#allocation8 + $0x8] sm:$0xff] %vm47_vm0, %v169_v18 }
 0x11a   :  { %170 = vst.msk [vmem:[#allocation8] sm:$0xff] %vm47_vm0, %v168_v19 }
 0x11b   :  { %287 = shalt.err (!%p284_p6)
}
 0x11c   :  { %s288_s15 = scalar_lea.hbm %s391_s3, 256 }
 0x11d   :  { %p289_p7 = scmp.ne.s32.totalorder %s391_s3, %s288_s15  ;;  %p292_p8 = scmp.lt.u32.totalorder %s288_s15, %s391_s3 }
 0x11f   :  { %p294_p9 = pnand %p292_p8, %p289_p7 }
 0x121   :  { %297 = shalt.err (!%p294_p9)
}
 0x122   :  { %183 = dma.vmem_to_hbm [thread:$0]  %s178_s12, 256, %s391_s3, [#allocation5], %s305_s22, %s305_s22, %s306_s23  }
 0x123   :  { %302 = dma.done.wait [#allocation5], 256  }
 0x124   :  { %303 = vsyncadd [#allocation5], 4294967040 }
 0x125   :  { %187 = vsyncpa [#allocation4], 1 }
 0x126   :  { %188 = vsyncpa [#allocation7], 1 }
 0x127   :  { %189 = vsyncpa [#allocation5], 1 }

</bundles_post_ra>
